<compile_context>
chip_gen: v6e
topology: v6e:2x2x1
jax: 0.10.0
libtpu: 0.0.40
codegen_flags: <defaults>
</compile_context>

<pallas_src>
import jax
import jax.numpy as jnp
from jax.experimental import pallas as pl
from jax.experimental.pallas import tpu as pltpu


def _conv1x1_kernel(x_ref, w_ref, b_ref, o_ref):
    # x_ref: (C_in, TILE)        spatial pixels on the lane (fast) axis
    # w_ref: (num_classes, C_in) resident across the whole grid
    # b_ref: (num_classes, 1)    broadcast over lanes in-kernel
    # o_ref: (num_classes, TILE) lane-dense output store
    acc = jnp.dot(w_ref[...], x_ref[...], preferred_element_type=jnp.float32)
    o_ref[...] = (acc + b_ref[...]).astype(o_ref.dtype)


def _choose_tile(hw, target=4096):
    """Largest spatial tile <= target that divides hw (multiple of 128 if possible).

    target=4096 keeps double-buffered (C_in + num_classes) * tile * 4B tiles a
    few MiB even for realistic C_in (~256), well within v7x's 64 MiB VMEM.
    """
    if hw <= target:
        return hw
    t = (target // 128) * 128
    while t >= 128:
        if hw % t == 0:
            return t
        t -= 128
    return hw


def semseg_output_forward(x_nchw, weight, bias, *, tile=None):
    """Equivalent of nn.Conv2d(dim_in, num_classes, 1)(x).

    x_nchw : (N, C_in, H, W)
    weight : (num_classes, C_in, 1, 1)   (PyTorch conv weight layout)
    bias   : (num_classes,)
    returns: (N, num_classes, H, W)
    """
    N, C_in, H, W = x_nchw.shape
    num_classes = weight.shape[0]
    HW = H * W

    if tile is None:
        tile = _choose_tile(HW)
    assert HW % tile == 0, "spatial tile must divide H*W"
    n_tiles = HW // tile

    # Free reshapes only (contiguous dims) — no HBM transpose passes.
    x3 = x_nchw.reshape(N, C_in, HW)
    w_mat = weight[:, :, 0, 0]             # (num_classes, C_in)
    b_mat = bias.reshape(num_classes, 1)   # (num_classes, 1)

    out3 = pl.pallas_call(
        _conv1x1_kernel,
        out_shape=jax.ShapeDtypeStruct((N, num_classes, HW), x_nchw.dtype),
        grid=(N, n_tiles),
        in_specs=[
            # x: one spatial tile per grid step, batch dim squeezed out.
            # (If DMA is still exposed in a trace, pipeline_mode=pl.Buffered(3)
            #  on this spec is a cheap further lever.)
            pl.BlockSpec((None, C_in, tile), lambda n, j: (n, 0, j)),
            # weight / bias: constant index_map -> fetched once, resident.
            pl.BlockSpec((num_classes, C_in), lambda n, j: (0, 0)),
            pl.BlockSpec((num_classes, 1), lambda n, j: (0, 0)),
        ],
        out_specs=pl.BlockSpec((None, num_classes, tile), lambda n, j: (n, 0, j)),
        compiler_params=pltpu.CompilerParams(
            # No reduction across the grid -> both axes parallel
            # (lets v7x shard grid steps across its 2 TensorCores).
            dimension_semantics=("parallel", "parallel"),
        ),
    )(x3, w_mat, b_mat)

    return out3.reshape(N, num_classes, H, W)


def init_params(key, dim_in, num_classes, dtype=jnp.float32):
    """kaiming_normal_(mode='fan_out', nonlinearity='relu'); bias = 0."""
    # fan_out for a 1x1 conv = num_classes * 1 * 1
    std = (2.0 / num_classes) ** 0.5
    weight = std * jax.random.normal(key, (num_classes, dim_in, 1, 1), dtype=dtype)
    bias = jnp.zeros((num_classes,), dtype=dtype)
    return weight, bias


if __name__ == "__main__":
    # Small shapes consistent with the module: dim_in=4, num_classes=8.
    N, C_IN, H, W = 2, 4, 16, 16
    NUM_CLASSES = 8

    key = jax.random.PRNGKey(0)
    k_x, k_w = jax.random.split(key)

    x = jax.random.normal(k_x, (N, C_IN, H, W), dtype=jnp.float32)
    weight, bias = init_params(k_w, C_IN, NUM_CLASSES)

    # Force tile=128 at this toy size so the spatial grid axis is exercised.
    out = semseg_output_forward(x, weight, bias, tile=128)
    out = jax.block_until_ready(out)

    # Reference check against plain JAX (same math as the 1x1 conv).
    ref = jnp.einsum("nchw,oc->nohw", x, weight[:, :, 0, 0]) + bias[None, :, None, None]
    assert out.shape == (N, NUM_CLASSES, H, W)
    assert jnp.allclose(out, ref, atol=1e-5, rtol=1e-5)

    print("KERNEL_OK")
</pallas_src>

<mosaic_0001>
module attributes {stable_mosaic.version = 11 : i64} {
  func.func @_conv1x1_kernel(%arg0: i32, %arg1: i32, %arg2: memref<1x4x128xf32, #tpu.memory_space<vmem>>, %arg3: memref<8x4xf32, #tpu.memory_space<vmem>>, %arg4: memref<8x1xf32, #tpu.memory_space<vmem>>, %arg5: memref<1x8x128xf32, #tpu.memory_space<vmem>>) attributes {dimension_semantics = [#tpu.dimension_semantics<parallel>, #tpu.dimension_semantics<parallel>], iteration_bounds = array<i64: 2, 2>, scalar_prefetch = 0 : i64, scratch_operands = 0 : i64, tpu.core_type = #tpu.core_type<tc>, window_params = [{transform_indices = @transform_0, window_bounds = array<i64: 1, 4, 128>}, {pipeline_mode = #tpu.pipeline_mode<synchronous>, transform_indices = @transform_1, window_bounds = array<i64: 8, 4>}, {pipeline_mode = #tpu.pipeline_mode<synchronous>, transform_indices = @transform_2, window_bounds = array<i64: 8, 1>}, {transform_indices = @transform_3, window_bounds = array<i64: 1, 8, 128>}]} {
    %c0 = arith.constant 0 : index
    %c0_0 = arith.constant 0 : index
    %0 = vector.load %arg3[%c0, %c0_0] : memref<8x4xf32, #tpu.memory_space<vmem>>, vector<8x4xf32>
    %c0_1 = arith.constant 0 : index
    %c0_2 = arith.constant 0 : index
    %c0_3 = arith.constant 0 : index
    %1 = vector.load %arg2[%c0_1, %c0_2, %c0_3] : memref<1x4x128xf32, #tpu.memory_space<vmem>>, vector<1x4x128xf32>
    %2 = vector.shape_cast %1 : vector<1x4x128xf32> to vector<4x128xf32>
    %cst = arith.constant dense<0.000000e+00> : vector<8x128xf32>
    %3 = tpu.matmul %0, %2, %cst {dimension_numbers = #tpu.dot_dimension_numbers<[1], [0], [0], [1], [0, 0, 1, 1], [], []>} : vector<8x4xf32>, vector<4x128xf32>, vector<8x128xf32> -> vector<8x128xf32>
    %c0_4 = arith.constant 0 : index
    %c0_5 = arith.constant 0 : index
    %4 = vector.load %arg4[%c0_4, %c0_5] : memref<8x1xf32, #tpu.memory_space<vmem>>, vector<8x1xf32>
    %5 = vector.broadcast %4 : vector<8x1xf32> to vector<8x128xf32>
    %6 = arith.addf %3, %5 : vector<8x128xf32>
    %c0_6 = arith.constant 0 : index
    %c0_7 = arith.constant 0 : index
    %c0_8 = arith.constant 0 : index
    %7 = vector.load %arg5[%c0_6, %c0_7, %c0_8] : memref<1x8x128xf32, #tpu.memory_space<vmem>>, vector<1x8x128xf32>
    %8 = vector.shape_cast %7 : vector<1x8x128xf32> to vector<8x128xf32>
    %9 = vector.shape_cast %6 : vector<8x128xf32> to vector<1x8x128xf32>
    tpu.vector_store %arg5[%c0_6, %c0_7, %c0_8], %9 {strides = array<i32>} : memref<1x8x128xf32, #tpu.memory_space<vmem>>, vector<1x8x128xf32>,
    return
  }
  func.func @transform_0(%arg0: i32, %arg1: i32) -> (i32, i32, i32) {
    %c0_i32 = arith.constant 0 : i32
    %c0_i32_0 = arith.constant 0 : i32
    return %arg0, %c0_i32, %arg1 : i32, i32, i32
  }
  func.func @transform_1(%arg0: i32, %arg1: i32) -> (i32, i32) {
    %c0_i32 = arith.constant 0 : i32
    %c0_i32_0 = arith.constant 0 : i32
    %c0_i32_1 = arith.constant 0 : i32
    return %c0_i32, %c0_i32_0 : i32, i32
  }
  func.func @transform_2(%arg0: i32, %arg1: i32) -> (i32, i32) {
    %c0_i32 = arith.constant 0 : i32
    %c0_i32_0 = arith.constant 0 : i32
    %c0_i32_1 = arith.constant 0 : i32
    return %c0_i32, %c0_i32_0 : i32, i32
  }
  func.func @transform_3(%arg0: i32, %arg1: i32) -> (i32, i32, i32) {
    %c0_i32 = arith.constant 0 : i32
    %c0_i32_0 = arith.constant 0 : i32
    return %arg0, %c0_i32, %arg1 : i32, i32, i32
  }
}

</mosaic_0001>

<bundles_post_ra>
// kernel: tpu_custom_call.1
= control target key start
LH: loop header
LB: loop body
LE: loop exit
PB: predicated region body
PF: predicated region fallthrough
CT: control target
= control target key end

     0   :  { %8 = vsyncpa [#allocation3], 0  ;;  %s726_s0 = inlined_call_operand.vmem [shape: f32[2,4,256], index: 0, kind: input, shape index: {}]   ;;  %s727_s1 = inlined_call_operand.vmem [shape: f32[8,4], index: 1, kind: input, shape index: {}]   ;;  %s728_s2 = inlined_call_operand.vmem [shape: f32[8,1], index: 2, kind: input, shape index: {}]   ;;  %s729_s3 = inlined_call_operand.hbm [shape: f32[2,8,256], index: 3, kind: output, shape index: {}]  }
   0x1   :  { %10 = vsyncpa [#allocation3 + $0x1], 0  ;;  %s590_s12 = smov 0   ;;  %s592_s13 = smov 0  }
   0x2   :  { %s594_s14 = smov 0   ;;  %s596_s15 = smov 0  }
   0x3   :  { %s598_s16 = smov 0   ;;  %s600_s17 = smov 0  }
   0x4   :  { %s602_s18 = smov 0   ;;  %s604_s19 = smov 0  }
   0x5 LB: > { %s375_s20 = sadd.s32 4294967295, %s564_s19   ;;  %s376_s21 = sadd.s32 4294967294, %s564_s19   ;;  %s564_s19 = sphi %s604_s19, %s16_s19   ;;  %s560_s18 = sphi %s602_s18, %s738_s18   ;;  %s556_s17 = sphi %s600_s17, %s737_s17   ;;  %s552_s16 = sphi %s598_s16, %s736_s16   ;;  %s548_s15 = sphi %s596_s15, %s735_s15   ;;  %s544_s14 = sphi %s594_s14, %s734_s14   ;;  %s540_s13 = sphi %s592_s13, %s733_s13   ;;  %s536_s12 = sphi %s590_s12, %s732_s12  }
   0x6   : > { %s25_s22 = sadd.s32 1, %s556_s17  ;;  %s28_s23 = sadd.s32 1, %s560_s18 }
   0x7   : > { %p26_p0 = scmp.ge.s32.totalorder %s25_s22, 2  ;;  %p117_p1 = scmp.ne.s32.totalorder %s544_s14, %s540_s13 }
   0x8   : > { %p118_p2 = scmp.eq.s32.totalorder %s375_s20, 3  ;;  %p123_p5 = scmp.ne.s32.totalorder %s540_s13, %s536_s12 }
   0x9   : > { %s740_s22 = smov (%p26_p0, %s25_s22), 0  ;;  %s742_s23 = smov (!%p26_p0, %s28_s23), %s560_s18 }
   0xa   : > { %s103_s24 = ssub.s32 %s556_s17, %s740_s22  ;;  %p641_p3 = por %p118_p2, %p117_p1 }
   0xb   : > { %p30_p4 = scmp.ge.s32.totalorder %s742_s23, 2  ;;  %p124_p6 = scmp.eq.s32.totalorder %s376_s21, 3 }
   0xc   : > { %p379_p7 = scmp.ge.s32.totalorder %s564_s19, 1  ;;  %p159_p9 = scmp.lt.s32.totalorder %s564_s19, 5 }
   0xd   : > { %s744_s23 = smov (%p30_p4, %s742_s23), 0  ;;  %p650_p8 = por %p124_p6, %p123_p5 }
   0xe   : > { %s102_s27 = ssub.s32 %s560_s18, %s744_s23  ;;  %s107_s28 = sadd.s32 1, %s544_s14 }
   0xf   : > { %s104_s29 = sor.u32 %s103_s24, %s102_s27  ;;  %p160_p10 = pnand %p379_p7, %p159_p9 }
  0x10   : > { %p105_p11 = scmp.eq.s32.totalorder %s104_s29, 0  ;;  %p186_p12 = scmp.lt.s32.totalorder (!%p160_p10), %s552_s16, 1 }
  0x11   : > { %163 = sbr.rel (%p160_p10) target bundleno = 238 (0xee), region = 32  ;;  %p188_p13 = scmp.lt.s32.totalorder (!%p160_p10), %s548_s15, 1 }
  0x12   : > { %s659_s30 = scalar_select %p105_p11, %s544_s14, %s107_s28  }
  0x13   : > { %s183_s28 = sand.u32 (!%p160_p10), 1, %s540_s13   ;;  %s386_s4 = sshll.u32 (!%p160_p10), %s552_s16, 1 }
  0x14   : > { %s380_s29 = sshll.u32 (!%p160_p10), %s183_s28, 3  ;;  %s293_s5 = sadd.s32 (!%p160_p10), %s548_s15, %s386_s4 }
  0x15   : > { %s282_s20 = scalar_lea.sflag (!%p160_p10), [#allocation3], %s183_s28 }
  0x16   : > { %v566_v0 = vmov 0.0   ;;  %vm567_vm0 = vmmov 0   ;;  %v196_v1 = vld [vmem:[%s728_s2] sm:$0xff]  ;;  %s187_s6 = scalar_select %p186_p12, %s552_s16, 1  ;;  %v568_v2 = vmov 0   ;;  %vm206_vm1 = vcmask 1043456  }
  0x17   : > { %392 = vmatprep.subr.mxu0 %v566_v0  ;;  %394 = vmatprep.mubr.msk.f32.mxu0 %vm567_vm0, %v566_v0  ;;  %s189_s7 = scalar_select %p188_p13, %s548_s15, 1  ;;  %v194_v3 = vld [vmem:[%s727_s1] sm:$0xff]  ;;  %vm202_vm2 = vcmask 31744  }
  0x18   : > { %471 = vset.pattern.permute.xlu0 %v568_v2  ;;  %s381_s8 = sshll.u32 %s187_s6, 1  ;;  %s387_s6 = sshll.u32 %s293_s5, 7 }
  0x19   : > { %199 = vperm.xlu0 %471, %v196_v1   ;;  %s191_s9 = sadd.s32 %s381_s8, %s189_s7  ;;  %s185_s7 = scalar_lea.vmem [#allocation2], %s380_s29 }
  0x1a   : > { %s382_s10 = sshll.u32 %s191_s9, 2  ;;  %s297_s8 = sshll.u32 %s185_s7, 4  ;;  %s298_s8 = int_to_ptr.vmem [resolvable:$true] %s297_s8 }
  0x1b   : > { %s193_s21 = scalar_lea.vmem %s726_s0, %s382_s10  ;;  %s680_s11 = scalar_lea.hbm %s729_s3, %s387_s6 }
  0x1c   : > { %v195_v4 = vld [vmem:[%s193_s21] sm:$0xf]  ;;  %s472_s21 = scalar_lea.vmem %s298_s8, 128  ;;  %s569_s15 = smov [#allocation2]  }
  0x1d   : > { %393 = vmatpush3.msk.msra.mxu0 %vm206_vm1, %v195_v4  ;;  %p473_p0 = scmp.ne.s32.totalorder %s298_s8, %s472_s21  ;;  %s476_s16 = sshll.u32 %s569_s15, 4  ;;  %s477_s16 = int_to_ptr.vmem [resolvable:$false] %s476_s16 }
  0x1e   : > { %395 = vmatmul.mubr.msk.f32.vlgmr.msra.gmra.mxu0 %vm202_vm2, %v194_v3  ;;  %s478_s24 = scalar_lea.vmem %s477_s16, 256  ;;  %p479_p4 = scmp.lt.s32.totalorder %s298_s8, %s477_s16 }
  0x1f   : > { %p474_p1 = pnand %p473_p0, %p641_p3  ;;  %p480_p5 = scmp.lt.s32.totalorder %s478_s24, %s472_s21 }
  0x21   : > { %p475_p2 = pneg %p474_p1  ;;  %p481_p6 = por %p480_p5, %p479_p4 }
  0x23   : > { %p482_p7 = pnand %p481_p6, %p475_p2 }
  0x94   : > { %v200_v5 = vpop.permute.xlu0 %199 }
  0xde   : > { %v276_v6 = vpop.f32.mrf.mxu0 }
  0xdf   : > { %v277_v7 = vadd.f32 %v276_v6, %v200_v5 }
  0xe0   : > { %v396_v8 = vpop.f32.mrf.mxu0 }
  0xe1   : > { %280 = vst [vmem:[%s185_s7] sm:$0xff] %v277_v7 }
  0xe2   : > { %485 = shalt.err (!%p482_p7)
}
  0xe3   : > { %s486_s27 = scalar_lea.hbm %s680_s11, 128  ;;  %s490_s4 = scalar_lea.hbm %s729_s3, 512 }
  0xe4   : > { %p487_p9 = scmp.ne.s32.totalorder %s680_s11, %s486_s27  ;;  %p491_p12 = scmp.lt.s32.totalorder %s680_s11, %s729_s3 }
  0xe5   : > { %p492_p13 = scmp.lt.s32.totalorder %s490_s4, %s486_s27 }
  0xe6   : > { %p488_p10 = pnand %p487_p9, %p641_p3 }
  0xe7   : > { %p493_p0 = por %p492_p13, %p491_p12 }
  0xe8   : > { %p489_p11 = pneg %p488_p10 }
  0xea   : > { %p494_p1 = pnand %p493_p0, %p489_p11 }
  0xec   : > { %497 = shalt.err (!%p494_p1)
}
  0xed   : > { %397 = dma.vmem_to_hbm [thread:$0]  (%p641_p3), %s298_s8, 128, %s680_s11, %s282_s20  }
  0xee PF: > { %p403_p2 = scmp.ge.s32.totalorder %s564_s19, 2  ;;  %s309_s7 = sand.u32 1, %s536_s12  }
  0xef   : > { %s310_s9 = scalar_lea.sflag [#allocation3], %s309_s7 }
  0xf0   : > { %p400_p4 = pnand %p403_p2, %p650_p8 }
  0xf2   : > { %p401_p5 = pneg %p400_p4 }
  0xf4   : > { %531 = dma.done.wait (%p401_p5), %s310_s9, 128  }
  0xf5   : > { %533 = vsyncadd (%p401_p5), %s310_s9, 4294967168  ;;  %s16_s19 = sadd.s32 1, %s564_s19   ;;  %s732_s12 = smov %s540_s13 }
  0xf6   : > { %p13_p6 = scmp.ge.s32.totalorder %s16_s19, 6   ;;  %s733_s13 = smov %s544_s14 }
  0xf7   : > { %s734_s14 = smov %s659_s30  ;;  %s735_s15 = smov %s556_s17 }
  0xf8   : > { %s736_s16 = smov %s560_s18  ;;  %s737_s17 = smov %s740_s22 }
  0xf9   : > { %s738_s18 = smov %s744_s23  ;;  %15 = sbr.rel (!%p13_p6) target bundleno = 5 (0x5), region = 67 }
  0xfe   :  { %315 = vsyncpa [#allocation3], 1 }
  0xff   :  { %317 = vsyncpa [#allocation3 + $0x1], 1 }

</bundles_post_ra>
